<compile_context>
chip_gen: v7x
topology: tpu7x:2x2x1
jax: 0.10.0
libtpu: 0.0.40
codegen_flags: <defaults>
</compile_context>

<pallas_src>
import jax
import jax.numpy as jnp
from jax import lax
from jax.experimental import pallas as pl
from jax.experimental.pallas import tpu as pltpu


def _round_up(x, m):
    return ((x + m - 1) // m) * m


def _mlp_kernel(x_ref, w1_ref, w2_ref, w3_ref, pb_ref, o_ref):
    """Batch-major MLP tile.

    x_ref : [tb, in_dim]          (batch on sublanes, features on lanes)
    w1    : [in_dim, hidden]
    w2    : [hidden, hidden//2]
    w3    : [out_dim, hidden//2]  (PyTorch layout; contracted on last dim)
    pb    : [3, width] f32        packed biases: row0=b1, row1=b2, row2=b3
    o_ref : [tb, out_dim] f32
    """
    hidden = w1_ref.shape[1]
    h2dim = w2_ref.shape[1]
    out_dim = w3_ref.shape[0]

    b1 = pb_ref[0:1, :hidden]        # [1, hidden] — broadcasts over batch rows
    b2 = pb_ref[1:2, :h2dim]
    b3 = pb_ref[2:3, :out_dim]

    # Linear(in_dim, hidden) + ReLU   (Dropout = identity at eval)
    h1 = jnp.dot(x_ref[...], w1_ref[...], preferred_element_type=jnp.float32)
    h1 = jnp.maximum(h1 + b1, 0.0)

    # Linear(hidden, hidden//2) + ReLU (Dropout = identity at eval)
    h2 = jnp.dot(h1.astype(w2_ref.dtype), w2_ref[...],
                 preferred_element_type=jnp.float32)
    h2 = jnp.maximum(h2 + b2, 0.0)

    # Linear(hidden//2, out_dim) + Tanh
    if out_dim == 1:
        # An N=1 matmul lights a single MXU column; VPU multiply + XLU
        # lane-reduce is cheaper and stays off the MXU.
        w3_row = w3_ref[...].astype(jnp.float32)           # [1, h2dim]
        y = jnp.sum(h2 * w3_row, axis=1, keepdims=True) + b3
    else:
        y = lax.dot_general(
            h2.astype(w3_ref.dtype), w3_ref[...],
            dimension_numbers=(((1,), (1,)), ((), ())),
            preferred_element_type=jnp.float32) + b3

    y = jnp.tanh(y)
    # torch.clamp(output, -0.7, 1.2)
    o_ref[...] = jnp.clip(y, -0.7, 1.2).astype(o_ref.dtype)


def regression_head_forward(x, params, *, tb_max=8192, use_bf16=False):
    """Full RegressionHead forward (eval mode) in one Pallas kernel.

    x: [B, in_dim] float32.  Returns [B, out_dim] float32.
    params: (w1t [in,hidden], w2t [hidden,h2], w3 [out,h2], pb [3,width]) —
    build with `pack_params`.
    """
    w1t, w2t, w3, pb = params
    B, in_dim = x.shape
    hidden = w1t.shape[1]
    h2dim = w2t.shape[1]
    out_dim = w3.shape[0]

    # Batch tiling: pad only to a sublane multiple (8) and split evenly so the
    # tiles exactly cover b_pad (dead-row waste < 8 * n_tiles, not up to tb-1).
    b_pad8 = _round_up(max(B, 1), 8)
    n_tiles = pl.cdiv(b_pad8, tb_max)
    tb = _round_up(pl.cdiv(b_pad8, n_tiles), 8)
    b_pad = tb * n_tiles

    if b_pad != B:
        # Small pad (<= 8*n_tiles-1 rows); padded rows are sliced off below.
        x = jnp.pad(x, ((0, b_pad - B), (0, 0)))

    stream_dtype = jnp.bfloat16 if use_bf16 else x.dtype
    xs = x.astype(stream_dtype)
    w1s = w1t.astype(stream_dtype)
    w2s = w2t.astype(stream_dtype)
    w3s = w3.astype(stream_dtype)
    # Biases (pb) stay f32: all elementwise/EUP math is f32 on every chip.

    itemsize = jnp.dtype(stream_dtype).itemsize
    flops = 2 * b_pad * (in_dim * hidden + hidden * h2dim + h2dim * out_dim)
    bytes_accessed = (itemsize * (xs.size + w1s.size + w2s.size + w3s.size)
                      + 4 * (pb.size + b_pad * out_dim))
    cost = pl.CostEstimate(flops=flops, transcendentals=b_pad * out_dim,
                           bytes_accessed=bytes_accessed)

    resident = lambda shape: pl.BlockSpec(shape, lambda i: (0, 0))

    out = pl.pallas_call(
        _mlp_kernel,
        out_shape=jax.ShapeDtypeStruct((b_pad, out_dim), jnp.float32),
        grid=(n_tiles,),
        in_specs=[
            pl.BlockSpec((tb, in_dim), lambda i: (i, 0)),   # x: pipelined per tile
            resident(w1s.shape),                            # params: DMA'd once,
            resident(w2s.shape),                            # resident across tiles
            resident(w3s.shape),
            resident(pb.shape),
        ],
        out_specs=pl.BlockSpec((tb, out_dim), lambda i: (i, 0)),
        compiler_params=pltpu.CompilerParams(
            dimension_semantics=("parallel",)),             # v7x: 2 TCs share tiles
        cost_estimate=cost,
    )(xs, w1s, w2s, w3s, pb)

    return out[:B]


def pack_params(w1, b1, w2, b2, w3, b3):
    """From PyTorch layouts (w: [out_f, in_f], b: [out_f]) to kernel layouts."""
    hidden, in_dim = w1.shape
    h2 = w2.shape[0]
    out_dim = w3.shape[0]
    width = max(hidden, h2, out_dim)
    pb = jnp.zeros((3, width), jnp.float32)
    pb = pb.at[0, :hidden].set(b1.astype(jnp.float32))
    pb = pb.at[1, :h2].set(b2.astype(jnp.float32))
    pb = pb.at[2, :out_dim].set(b3.astype(jnp.float32))
    # One-time tiny host/trace-time transposes (not per-call data movement).
    return (w1.T, w2.T, w3, pb)


def init_params(key, in_dim, hidden_dim, out_dim):
    """xavier_normal_(gain=0.01) weights, zero biases, PyTorch layouts."""
    gain = 0.01

    def xavier(k, shape, fan_in, fan_out):
        std = gain * jnp.sqrt(2.0 / (fan_in + fan_out))
        return jax.random.normal(k, shape, dtype=jnp.float32) * std

    k1, k2, k3 = jax.random.split(key, 3)
    h2 = hidden_dim // 2
    w1 = xavier(k1, (hidden_dim, in_dim), in_dim, hidden_dim)
    b1 = jnp.zeros((hidden_dim,), jnp.float32)
    w2 = xavier(k2, (h2, hidden_dim), hidden_dim, h2)
    b2 = jnp.zeros((h2,), jnp.float32)
    w3 = xavier(k3, (out_dim, h2), h2, out_dim)
    b3 = jnp.zeros((out_dim,), jnp.float32)
    return w1, b1, w2, b2, w3, b3


def reference_forward(x, w1, b1, w2, b2, w3, b3):
    """Pure-JAX reference (HIGHEST precision so the allclose check is stable)."""
    hp = lax.Precision.HIGHEST
    h1 = jnp.maximum(jnp.dot(x, w1.T, precision=hp) + b1, 0.0)
    h2 = jnp.maximum(jnp.dot(h1, w2.T, precision=hp) + b2, 0.0)
    y = jnp.tanh(jnp.dot(h2, w3.T, precision=hp) + b3)
    return jnp.clip(y, -0.7, 1.2)


if __name__ == "__main__":
    key = jax.random.PRNGKey(0)

    # ---- Case A: module-style init (zero biases), out_dim=1, single tile ----
    B, IN_DIM, HIDDEN, OUT = 8, 32, 64, 1
    kx, kp = jax.random.split(key)
    x = jax.random.normal(kx, (B, IN_DIM), dtype=jnp.float32)
    w1, b1, w2, b2, w3, b3 = init_params(kp, IN_DIM, HIDDEN, OUT)
    params = pack_params(w1, b1, w2, b2, w3, b3)

    out = jax.block_until_ready(regression_head_forward(x, params))
    ref = reference_forward(x, w1, b1, w2, b2, w3, b3)
    assert out.shape == (B, OUT)
    assert jnp.allclose(out, ref, atol=1e-5, rtol=1e-4)

    # ---- Case B: ragged batch, out_dim>1, nonzero biases, multi-tile grid ---
    B2, OUT2 = 70, 3
    k1, k2, k3, k4, k5 = jax.random.split(kp, 5)
    x2 = jax.random.normal(k1, (B2, IN_DIM), dtype=jnp.float32)
    w1b, _, w2b, _, w3b, _ = init_params(k2, IN_DIM, HIDDEN, OUT2)
    b1b = 0.05 * jax.random.normal(k3, (HIDDEN,), dtype=jnp.float32)
    b2b = 0.05 * jax.random.normal(k4, (HIDDEN // 2,), dtype=jnp.float32)
    b3b = 0.05 * jax.random.normal(k5, (OUT2,), dtype=jnp.float32)
    params2 = pack_params(w1b, b1b, w2b, b2b, w3b, b3b)
    out2 = jax.block_until_ready(
        regression_head_forward(x2, params2, tb_max=16))   # forces a 5-tile grid
    ref2 = reference_forward(x2, w1b, b1b, w2b, b2b, w3b, b3b)
    assert out2.shape == (B2, OUT2)
    assert jnp.allclose(out2, ref2, atol=1e-5, rtol=1e-4)

    # ---- Case C: optional bf16 streaming (v6e/v7x HBM/MXU option) -----------
    out3 = jax.block_until_ready(
        regression_head_forward(x2, params2, tb_max=16, use_bf16=True))
    assert jnp.allclose(out3, ref2, atol=5e-2, rtol=5e-2)

    # TODO(synk): training-mode Dropout (stochastic masking via pltpu.prng_*)
    # is omitted; eval-mode identity matches inference semantics.
    print("KERNEL_OK")
</pallas_src>

<mosaic_0001>
module attributes {stable_mosaic.version = 11 : i64} {
  func.func @_mlp_kernel(%arg0: i32, %arg1: memref<8x32xf32, #tpu.memory_space<vmem>>, %arg2: memref<32x64xf32, #tpu.memory_space<vmem>>, %arg3: memref<64x32xf32, #tpu.memory_space<vmem>>, %arg4: memref<1x32xf32, #tpu.memory_space<vmem>>, %arg5: memref<3x64xf32, #tpu.memory_space<vmem>>, %arg6: memref<8x1xf32, #tpu.memory_space<vmem>>) attributes {dimension_semantics = [#tpu.dimension_semantics<parallel>], iteration_bounds = array<i64: 1>, scalar_prefetch = 0 : i64, scratch_operands = 0 : i64, tpu.core_type = #tpu.core_type<tc>, window_params = [{transform_indices = @transform_0, window_bounds = array<i64: 8, 32>}, {pipeline_mode = #tpu.pipeline_mode<synchronous>, transform_indices = @transform_1, window_bounds = array<i64: 32, 64>}, {pipeline_mode = #tpu.pipeline_mode<synchronous>, transform_indices = @transform_2, window_bounds = array<i64: 64, 32>}, {pipeline_mode = #tpu.pipeline_mode<synchronous>, transform_indices = @transform_3, window_bounds = array<i64: 1, 32>}, {pipeline_mode = #tpu.pipeline_mode<synchronous>, transform_indices = @transform_4, window_bounds = array<i64: 3, 64>}, {transform_indices = @transform_5, window_bounds = array<i64: 8, 1>}]} {
    %c0 = arith.constant 0 : index
    %c0_0 = arith.constant 0 : index
    %0 = vector.load %arg5[%c0, %c0_0] : memref<3x64xf32, #tpu.memory_space<vmem>>, vector<1x64xf32>
    %c1 = arith.constant 1 : index
    %c0_1 = arith.constant 0 : index
    %1 = vector.load %arg5[%c1, %c0_1] : memref<3x64xf32, #tpu.memory_space<vmem>>, vector<1x32xf32>
    %c2 = arith.constant 2 : index
    %c0_2 = arith.constant 0 : index
    %2 = vector.load %arg5[%c2, %c0_2] : memref<3x64xf32, #tpu.memory_space<vmem>>, vector<1x1xf32>
    %c0_3 = arith.constant 0 : index
    %c0_4 = arith.constant 0 : index
    %3 = vector.load %arg1[%c0_3, %c0_4] : memref<8x32xf32, #tpu.memory_space<vmem>>, vector<8x32xf32>
    %c0_5 = arith.constant 0 : index
    %c0_6 = arith.constant 0 : index
    %4 = vector.load %arg2[%c0_5, %c0_6] : memref<32x64xf32, #tpu.memory_space<vmem>>, vector<32x64xf32>
    %cst = arith.constant dense<0.000000e+00> : vector<8x64xf32>
    %5 = tpu.matmul %3, %4, %cst {dimension_numbers = #tpu.dot_dimension_numbers<[1], [0], [0], [1], [0, 0, 1, 1], [], []>} : vector<8x32xf32>, vector<32x64xf32>, vector<8x64xf32> -> vector<8x64xf32>
    %6 = vector.broadcast %0 : vector<1x64xf32> to vector<8x64xf32>
    %7 = arith.addf %5, %6 : vector<8x64xf32>
    %cst_7 = arith.constant 0.000000e+00 : f32
    %8 = vector.broadcast %cst_7 : f32 to vector<8x64xf32>
    %9 = arith.maximumf %7, %8 : vector<8x64xf32>
    %c0_8 = arith.constant 0 : index
    %c0_9 = arith.constant 0 : index
    %10 = vector.load %arg3[%c0_8, %c0_9] : memref<64x32xf32, #tpu.memory_space<vmem>>, vector<64x32xf32>
    %cst_10 = arith.constant dense<0.000000e+00> : vector<8x32xf32>
    %11 = tpu.matmul %9, %10, %cst_10 {dimension_numbers = #tpu.dot_dimension_numbers<[1], [0], [0], [1], [0, 0, 1, 1], [], []>} : vector<8x64xf32>, vector<64x32xf32>, vector<8x32xf32> -> vector<8x32xf32>
    %12 = vector.broadcast %1 : vector<1x32xf32> to vector<8x32xf32>
    %13 = arith.addf %11, %12 : vector<8x32xf32>
    %cst_11 = arith.constant 0.000000e+00 : f32
    %14 = vector.broadcast %cst_11 : f32 to vector<8x32xf32>
    %15 = arith.maximumf %13, %14 : vector<8x32xf32>
    %c0_12 = arith.constant 0 : index
    %c0_13 = arith.constant 0 : index
    %16 = vector.load %arg4[%c0_12, %c0_13] : memref<1x32xf32, #tpu.memory_space<vmem>>, vector<1x32xf32>
    %17 = vector.broadcast %16 : vector<1x32xf32> to vector<8x32xf32>
    %18 = arith.mulf %15, %17 : vector<8x32xf32>
    %cst_14 = arith.constant dense<0.000000e+00> : vector<8xf32>
    %19 = vector.multi_reduction <add>, %18, %cst_14 [1] : vector<8x32xf32> to vector<8xf32>
    %20 = vector.shape_cast %19 : vector<8xf32> to vector<8x1xf32>
    %21 = vector.broadcast %2 : vector<1x1xf32> to vector<8x1xf32>
    %22 = arith.addf %20, %21 : vector<8x1xf32>
    %23 = math.tanh %22 : vector<8x1xf32>
    %cst_15 = arith.constant -0.699999988 : f32
    %cst_16 = arith.constant 1.200000e+00 : f32
    %24 = vector.broadcast %cst_15 : f32 to vector<8x1xf32>
    %25 = arith.maximumf %24, %23 : vector<8x1xf32>
    %26 = vector.broadcast %cst_16 : f32 to vector<8x1xf32>
    %27 = arith.minimumf %26, %25 : vector<8x1xf32>
    %c0_17 = arith.constant 0 : index
    %c0_18 = arith.constant 0 : index
    %28 = vector.load %arg6[%c0_17, %c0_18] : memref<8x1xf32, #tpu.memory_space<vmem>>, vector<8x1xf32>
    tpu.vector_store %arg6[%c0_17, %c0_18], %27 {strides = array<i32>} : memref<8x1xf32, #tpu.memory_space<vmem>>, vector<8x1xf32>,
    return
  }
  func.func @transform_0(%arg0: i32) -> (i32, i32) {
    %c0_i32 = arith.constant 0 : i32
    %c0_i32_0 = arith.constant 0 : i32
    return %arg0, %c0_i32 : i32, i32
  }
  func.func @transform_1(%arg0: i32) -> (i32, i32) {
    %c0_i32 = arith.constant 0 : i32
    %c0_i32_0 = arith.constant 0 : i32
    %c0_i32_1 = arith.constant 0 : i32
    return %c0_i32, %c0_i32_0 : i32, i32
  }
  func.func @transform_2(%arg0: i32) -> (i32, i32) {
    %c0_i32 = arith.constant 0 : i32
    %c0_i32_0 = arith.constant 0 : i32
    %c0_i32_1 = arith.constant 0 : i32
    return %c0_i32, %c0_i32_0 : i32, i32
  }
  func.func @transform_3(%arg0: i32) -> (i32, i32) {
    %c0_i32 = arith.constant 0 : i32
    %c0_i32_0 = arith.constant 0 : i32
    %c0_i32_1 = arith.constant 0 : i32
    return %c0_i32, %c0_i32_0 : i32, i32
  }
  func.func @transform_4(%arg0: i32) -> (i32, i32) {
    %c0_i32 = arith.constant 0 : i32
    %c0_i32_0 = arith.constant 0 : i32
    %c0_i32_1 = arith.constant 0 : i32
    return %c0_i32, %c0_i32_0 : i32, i32
  }
  func.func @transform_5(%arg0: i32) -> (i32, i32) {
    %c0_i32 = arith.constant 0 : i32
    %c0_i32_0 = arith.constant 0 : i32
    return %arg0, %c0_i32 : i32, i32
  }
}

</mosaic_0001>

<bundles_post_ra>
// kernel: tpu_custom_call.1
= control target key start
LH: loop header
LB: loop body
LE: loop exit
PB: predicated region body
PF: predicated region fallthrough
CT: control target
= control target key end

     0   :  { %v292_v0 = vmov 0.0|0.0   ;;  %vm293_vm0 = vmmov 0   ;;  %v294_v4 = vmov 0.0   ;;  %vm32_vm1 = vcmask 261120   ;;  %s381_s1 = inlined_call_operand.vmem [shape: f32[32,64], index: 1, kind: input, shape index: {}]   ;;  %s382_s2 = inlined_call_operand.vmem [shape: f32[64,32], index: 2, kind: input, shape index: {}]   ;;  %s383_s0 = inlined_call_operand.vmem [shape: f32[8,32], index: 0, kind: input, shape index: {}]   ;;  %s384_s4 = inlined_call_operand.vmem [shape: f32[3,64], index: 4, kind: input, shape index: {}]   ;;  %s385_s3 = inlined_call_operand.vmem [shape: f32[1,32], index: 3, kind: input, shape index: {}]   ;;  %s386_s5 = inlined_call_operand.vmem [shape: f32[8,1], index: 5, kind: output, shape index: {}]  }
   0x1   :  { %269 = vmatprep.subr.bf16.mxu0 %v292_v0  ;;  %v24_v1 = vld [vmem:[%s381_s1] sm:$0xff]  ;;  %v25_v2 = vld [vmem:[%s381_s1 + $0x8] sm:$0xff]  ;;  %v26_v3 = vld [vmem:[%s381_s1 + $0x10] sm:$0xff]  ;;  %247 = vmatprep.mubr.msk.f32.mxu0 %vm293_vm0, %v294_v4  ;;  %vm119_vm2 = vcmask 523264   ;;  %vm213_vm3 = vcmask 7168  }
   0x2   :  { %v270_v5 = vpack.c.bf16 %v25_v2, %v24_v1  ;;  %v27_v6 = vld [vmem:[%s381_s1 + $0x18] sm:$0xff]  ;;  %275 = vmatprep.subr.bf16.mxu1 %v292_v0  ;;  %v107_v7 = vld [vmem:[%s382_s2] sm:$0xff]  ;;  %266 = vmatprep.mubr.msk.f32.mxu1 %vm293_vm0, %v294_v4  ;;  %v108_v8 = vld [vmem:[%s382_s2 + $0x8] sm:$0xff] }
   0x3   :  { %v109_v9 = vld [vmem:[%s382_s2 + $0x10] sm:$0xff]  ;;  %v110_v10 = vld [vmem:[%s382_s2 + $0x18] sm:$0xff]  ;;  %v273_v11 = vpack.c.bf16 %v27_v6, %v26_v3  ;;  %v276_v12 = vpack.c.bf16 %v108_v8, %v107_v7  ;;  %v111_v14 = vld [vmem:[%s382_s2 + $0x20] sm:$0xff] }
   0x4   :  { %271 = vmatpush3.bf16.msra.mxu0 %v270_v5  ;;  %v279_v13 = vpack.c.bf16 %v110_v10, %v109_v9  ;;  %v112_v15 = vld [vmem:[%s382_s2 + $0x28] sm:$0xff]  ;;  %v23_v16 = vld [vmem:[%s383_s0] sm:$0xff]  ;;  %v113_v18 = vld [vmem:[%s382_s2 + $0x30] sm:$0xff] }
   0x5   :  { %272 = vmatprep.subr.bf16.mxu0 %v292_v0  ;;  %277 = vmatpush3.bf16.msra.mxu1 %v276_v12  ;;  %v282_v17 = vpack.c.bf16 %v112_v15, %v111_v14  ;;  %v114_v19 = vld [vmem:[%s382_s2 + $0x38] sm:$0xff]  ;;  %v219_v21 = vld [vmem:[%s384_s4] ss:$0 sm:$0xff]  ;;  %v221_v26 = vld [vmem:[%s384_s4 + $0x1] ss:$0 sm:$0xff] }
   0x6   :  { %278 = vmatprep.subr.bf16.mxu1 %v292_v0  ;;  %v285_v20 = vpack.c.bf16 %v114_v19, %v113_v18  ;;  %v223_v30 = vld [vmem:[%s385_s3] ss:$0 sm:$0xff]  ;;  %v224_v34 = vld [vmem:[%s384_s4 + $0x2] ss:$0 sm:$0xff] }
   0x8   :  { %274 = vmatpush3.bf16.msra.mxu0 %v273_v11 }
   0x9   :  { %280 = vmatpush3.bf16.msra.mxu1 %v279_v13 }
   0xa   :  { %281 = vmatprep.subr.bf16.mxu1 %v292_v0 }
   0xb   :  { %248 = vmatmul.mubr.msk.f32.vlgmr.msra.gmra.mrb[0].mxu0 %vm32_vm1, %v23_v16 }
   0xd   :  { %283 = vmatpush3.bf16.msra.mxu1 %v282_v17 }
   0xe   :  { %284 = vmatprep.subr.bf16.mxu1 %v292_v0 }
  0x11   :  { %286 = vmatpush3.bf16.msra.mxu1 %v285_v20 }
  0xde   :  { %v102_v22 = vpop.f32.mrb[0].mxu0 }
  0xdf   :  { %v103_v23 = vadd.f32 %v219_v21, %v102_v22  ;;  %v249_v24 = vpop.f32.mrb[1].mxu0 }
  0xe1   :  { %v106_v25 = vmax.f32 %v103_v23, 0.0 }
  0xe3   :  { %267 = vmatmul.mubr.msk.f32.vlgmr.msra.gmra.mrb[0].mxu1 %vm119_vm2, %v106_v25 }
 0x1b6   :  { %v189_v27 = vpop.f32.mrb[0].mxu1 }
 0x1b7   :  { %v190_v28 = vadd.f32 %v221_v26, %v189_v27  ;;  %v268_v29 = vpop.f32.mrb[1].mxu1 }
 0x1b9   :  { %v193_v31 = vmax.f32 %v190_v28, 0.0 }
 0x1bb   :  { %v201_v32 = vmul.f32 %v223_v30, %v193_v31 }
 0x1bd   :  { %v202_v33 = vsel %vm32_vm1, %v201_v32, 0.0 }
 0x1be   :  { %203 = vadd.xlane.f32.xlu0 %v202_v33 }
 0x24b   :  { %v204_v35 = vpop.xlane.xlu0 %203 }
 0x24c   :  { %v209_v36 = vadd.f32 %v224_v34, %v204_v35 }
 0x24e   :  { %290 = vtanh.f32 %v209_v36 }
 0x258   :  { %v291_v37 = vpop.eup %290 }
 0x259   :  { %v211_v38 = vmax.f32 %v291_v37, -0.7 }
 0x25b   :  { %v212_v39 = vmin.f32 %v211_v38, 1.2 }
 0x25d   :  { %214 = vst.msk [vmem:[%s386_s5] sm:$0xff] %vm213_vm3, %v212_v39 }

</bundles_post_ra>
